<compile_context>
chip_gen: v5e
topology: v5e:2x2
jax: 0.10.0
libtpu: 0.0.40
codegen_flags: <defaults>
</compile_context>

<pallas_src>
import jax
import jax.numpy as jnp
from jax.experimental import pallas as pl
from jax.experimental.pallas import tpu as pltpu


def _copy_kernel(x_ref, o_ref):
    # Pure identity copy of the current lane-dense tile.
    o_ref[...] = x_ref[...]


def _pick_lane_width(total, pack):
    """Largest lane width L (multiple of 128) dividing `total`, preferring one
    that leaves at least one full packed-sublane group of rows."""
    candidates = (8192, 4096, 2048, 1024, 512, 256, 128)
    for cand in candidates:
        if total % cand == 0 and total // cand >= pack:
            return cand
    for cand in candidates:
        if total % cand == 0:
            return cand
    return None


def _pick_tm(rows_slab, L, itemsize, pack, target_tile_bytes):
    """Row-tile height: multiple of the dtype sublane pack, ideally an exact
    divisor of rows_slab, capped so the grid keeps >= 2 blocks (v7x: both
    TensorCores drive HBM) and >= 4 blocks (pipeline overlap) when the input
    is large enough."""
    if rows_slab <= pack:
        return rows_slab  # full extent: always a legal block shape

    slab_bytes = rows_slab * L * itemsize
    target_rows = max(pack, (target_tile_bytes // (L * itemsize)) // pack * pack)

    cap = rows_slab
    if rows_slab >= 4 * pack and slab_bytes >= 4 * target_tile_bytes:
        cap = rows_slab // 4          # keep >= 4 grid steps on big inputs
    elif rows_slab >= 2 * pack:
        cap = rows_slab // 2          # keep >= 2 parallel blocks for v7x
    cap = max(pack, (cap // pack) * pack)

    tm0 = min(target_rows, cap, rows_slab)
    tm0 = max(pack, (tm0 // pack) * pack)

    # Prefer an exact divisor of rows_slab (no ragged/masked tail block).
    t = tm0
    while t >= pack:
        if rows_slab % t == 0:
            return t
        t -= pack
    return min(tm0, rows_slab)        # fall back: Pallas masks the tail


def rp_forward(x, batch_size, *, target_tile_bytes=8 * 1024 * 1024,
               use_pallas=True, donate_input=False):
    """Equivalent of rp.forward: x.view(batch_size * 128, -1)."""
    n_rows = batch_size * 128
    total = x.size
    if total % n_rows != 0:
        raise ValueError("input size must be divisible by batch_size * 128")
    n_cols = total // n_rows

    if not use_pallas:
        # Fastest possible implementation: metadata-only reshape (zero HBM
        # traffic).  Callers that can should use this path.
        return jnp.reshape(x, (n_rows, n_cols))

    itemsize = jnp.dtype(x.dtype).itemsize
    pack = max(8, 32 // itemsize)          # 8 f32 / 16 bf16 / 32 int8-fp8

    # ---- Lane-dense re-flatten ------------------------------------------
    L = _pick_lane_width(total, pack)
    if L is None:
        # Cannot happen for this module (total is a multiple of 128); fall
        # back to the natural layout with full-extent blocks.
        L = n_cols
        rows_slab = n_rows
    else:
        rows_slab = total // L
    x_slab = jnp.reshape(x, (rows_slab, L))

    # ---- Row tiling -------------------------------------------------------
    # Clamp the tile target so the derived VMEM request (4 buffers + headroom)
    # fits comfortably inside v7x's 64 MiB physical VMEM.
    target_tile_bytes = min(target_tile_bytes, 12 * 1024 * 1024)
    tm = _pick_tm(rows_slab, L, itemsize, pack, target_tile_bytes)
    grid = (pl.cdiv(rows_slab, tm),)

    tile_bytes = tm * L * itemsize
    # in + out, double-buffered, plus headroom; clamp to [16 MiB, 64 MiB].
    vmem_limit = min(max(4 * tile_bytes + (8 << 20), 16 << 20), 64 << 20)

    out_slab = pl.pallas_call(
        _copy_kernel,
        out_shape=jax.ShapeDtypeStruct((rows_slab, L), x.dtype),
        grid_spec=pltpu.PrefetchScalarGridSpec(
            num_scalar_prefetch=0,
            grid=grid,
            in_specs=[pl.BlockSpec((tm, L), lambda i: (i, 0))],
            out_specs=pl.BlockSpec((tm, L), lambda i: (i, 0)),
        ),
        compiler_params=pltpu.CompilerParams(
            dimension_semantics=("parallel",),
            vmem_limit_bytes=vmem_limit,
        ),
        cost_estimate=pl.CostEstimate(
            flops=0,
            transcendentals=0,
            bytes_accessed=2 * total * itemsize,
        ),
        # Alias in->out only when the caller donates x (inside a jit with
        # donate_argnums); halves peak HBM footprint there.  Left off by
        # default so the eager path never triggers a copy-insertion.
        input_output_aliases={0: 0} if donate_input else {},
    )(x_slab)

    # Metadata-only reshape back to the module's output shape.
    return jnp.reshape(out_slab, (n_rows, n_cols))


if __name__ == "__main__":
    key = jax.random.PRNGKey(0)

    # Case 1: the module's natural small shape (single-block grid).
    batch_size = 2
    feat = 32
    x = jax.random.normal(key, (batch_size, 128, feat), dtype=jnp.float32)
    y = jax.block_until_ready(rp_forward(x, batch_size))
    ref = jnp.reshape(x, (batch_size * 128, -1))
    assert y.shape == (batch_size * 128, feat)
    assert jnp.array_equal(y, ref)

    # Case 2: slightly larger input that exercises a multi-block parallel grid
    # (the v7x two-TensorCore path).
    batch_size2 = 4
    feat2 = 256
    x2 = jax.random.normal(jax.random.PRNGKey(0), (batch_size2, 128, feat2),
                           dtype=jnp.float32)
    y2 = jax.block_until_ready(rp_forward(x2, batch_size2))
    ref2 = jnp.reshape(x2, (batch_size2 * 128, -1))
    assert y2.shape == (batch_size2 * 128, feat2)
    assert jnp.array_equal(y2, ref2)

    print("KERNEL_OK")
</pallas_src>

<mosaic_0001>
module attributes {stable_mosaic.version = 11 : i64} {
  func.func @_copy_kernel(%arg0: i32, %arg1: memref<8x1024xf32, #tpu.memory_space<vmem>>, %arg2: memref<8x1024xf32, #tpu.memory_space<vmem>>) attributes {dimension_semantics = [#tpu.dimension_semantics<parallel>], iteration_bounds = array<i64: 1>, scalar_prefetch = 0 : i64, scratch_operands = 0 : i64, tpu.core_type = #tpu.core_type<tc>, window_params = [{transform_indices = @transform_0, window_bounds = array<i64: 8, 1024>}, {transform_indices = @transform_1, window_bounds = array<i64: 8, 1024>}]} {
    %c0 = arith.constant 0 : index
    %c0_0 = arith.constant 0 : index
    %0 = vector.load %arg1[%c0, %c0_0] : memref<8x1024xf32, #tpu.memory_space<vmem>>, vector<8x1024xf32>
    %c0_1 = arith.constant 0 : index
    %c0_2 = arith.constant 0 : index
    %1 = vector.load %arg2[%c0_1, %c0_2] : memref<8x1024xf32, #tpu.memory_space<vmem>>, vector<8x1024xf32>
    tpu.vector_store %arg2[%c0_1, %c0_2], %0 {strides = array<i32>} : memref<8x1024xf32, #tpu.memory_space<vmem>>, vector<8x1024xf32>,
    return
  }
  func.func @transform_0(%arg0: i32) -> (i32, i32) {
    %c0_i32 = arith.constant 0 : i32
    %c0_i32_0 = arith.constant 0 : i32
    return %arg0, %c0_i32 : i32, i32
  }
  func.func @transform_1(%arg0: i32) -> (i32, i32) {
    %c0_i32 = arith.constant 0 : i32
    %c0_i32_0 = arith.constant 0 : i32
    return %arg0, %c0_i32 : i32, i32
  }
}

</mosaic_0001>

<bundles_post_ra>
// kernel: tpu_custom_call.1
= control target key start
LH: loop header
LB: loop body
LE: loop exit
PB: predicated region body
PF: predicated region fallthrough
CT: control target
= control target key end

     0   :  { %6 = vsyncpa [#allocation3], 0  ;;  %s128_s0 = inlined_call_operand.hbm [shape: f32[8,1024], index: 0, kind: input, shape index: {}]   ;;  %s129_s1 = inlined_call_operand.hbm [shape: f32[8,1024], index: 1, kind: output, shape index: {}]  }
   0x1   :  { %7 = vsyncpa [#allocation4], 0  ;;  %s13_s8 = sshll.u32 %s128_s0, 4  ;;  %s110_s9 = smov [#allocation2]   ;;  %s14_s8 = int_to_ptr.hbm [resolvable:$true] %s13_s8 }
   0x2   :  { %s15_s10 = sshll.u32 %s110_s9, 4  ;;  %s16_s10 = int_to_ptr.vmem [resolvable:$true] %s15_s10 }
   0x3   :  { %18 = dma.hbm_to_vmem [thread:$0]  %s14_s8, 1024, %s16_s10, [#allocation3]  }
   0x4   :  { %106 = dma.done.wait [#allocation3], 1024  }
   0x5   :  { %107 = vsyncadd [#allocation3], 4294966272  ;;  %v23_v0 = vld [vmem:[#allocation2] sm:$0xff]  ;;  %v24_v1 = vld [vmem:[#allocation2 + $0x8] sm:$0xff]  ;;  %s111_s11 = smov [#allocation5]   ;;  %s46_s14 = sshll.u32 %s129_s1, 4  ;;  %s47_s14 = int_to_ptr.hbm [resolvable:$true] %s46_s14 }
   0x6   :  { %v25_v2 = vld [vmem:[#allocation2 + $0x10] sm:$0xff]  ;;  %31 = vst [vmem:[#allocation5] sm:$0xff] %v23_v0  ;;  %v26_v3 = vld [vmem:[#allocation2 + $0x18] sm:$0xff]  ;;  %v27_v4 = vld [vmem:[#allocation2 + $0x20] sm:$0xff]  ;;  %s44_s12 = sshll.u32 %s111_s11, 4  ;;  %s45_s12 = int_to_ptr.vmem [resolvable:$true] %s44_s12 }
   0x7   :  { %32 = vst [vmem:[#allocation5 + $0x8] sm:$0xff] %v24_v1  ;;  %v28_v5 = vld [vmem:[#allocation2 + $0x28] sm:$0xff]  ;;  %v29_v6 = vld [vmem:[#allocation2 + $0x30] sm:$0xff]  ;;  %v30_v7 = vld [vmem:[#allocation2 + $0x38] sm:$0xff] }
   0x8   :  { %33 = vst [vmem:[#allocation5 + $0x10] sm:$0xff] %v25_v2 }
   0x9   :  { %34 = vst [vmem:[#allocation5 + $0x18] sm:$0xff] %v26_v3 }
   0xa   :  { %35 = vst [vmem:[#allocation5 + $0x20] sm:$0xff] %v27_v4 }
   0xb   :  { %36 = vst [vmem:[#allocation5 + $0x28] sm:$0xff] %v28_v5 }
   0xc   :  { %37 = vst [vmem:[#allocation5 + $0x30] sm:$0xff] %v29_v6 }
   0xd   :  { %38 = vst [vmem:[#allocation5 + $0x38] sm:$0xff] %v30_v7 }
   0xe   :  { %49 = dma.vmem_to_hbm [thread:$0]  %s45_s12, 1024, %s47_s14, [#allocation4]  }
   0xf   :  { %108 = dma.done.wait [#allocation4], 1024  }
  0x10   :  { %109 = vsyncadd [#allocation4], 4294966272 }
  0x11   :  { %54 = vsyncpa [#allocation3], 1 }
  0x12   :  { %55 = vsyncpa [#allocation4], 1 }

</bundles_post_ra>
